<compile_context>
chip_gen: v5e
topology: v5e:2x2
jax: 0.10.0
libtpu: 0.0.40
codegen_flags: <defaults>
</compile_context>

<pallas_src>
import functools
import math

import jax
import jax.numpy as jnp
from jax import lax
from jax.experimental import pallas as pl
from jax.experimental.pallas import tpu as pltpu


def _ls_kl_kernel(
    logits_ref,   # (TN, C) native dtype
    labels_ref,   # (TN, 1) int32
    out_ref,      # (TN, 1) f32 per-row loss
    *,
    confidence: float,
    off_value: float,
    const_entropy: float,
):
    x = logits_ref[...]                       # (TN, C), native dtype
    labels = labels_ref[...]                  # (TN, 1) int32
    tn, c = x.shape

    # Row max in native dtype (XLU reduce), widened to f32 for the exp path.
    m = jnp.max(x, axis=1, keepdims=True).astype(jnp.float32)            # (TN, 1)

    # logsumexp: exp path in f32 (EUP); the cast+sub fuses into the exp producer.
    e = jnp.exp(x.astype(jnp.float32) - m)                               # (TN, C)
    lse = jnp.log(jnp.sum(e, axis=1, keepdims=True))                     # (TN, 1)

    # Plain class-axis sums go to the (otherwise idle) MXU with f32 accumulate.
    ones = jnp.ones((c, 1), dtype=x.dtype)
    sum_x = jnp.dot(x, ones, preferred_element_type=jnp.float32,
                    precision=lax.Precision.HIGHEST)                     # (TN, 1)

    # One-hot label pick stays in the native dtype; lane reduce on the MXU.
    class_ids = lax.broadcasted_iota(jnp.int32, (tn, c), 1)
    x_lab = jnp.where(class_ids == labels, x, jnp.zeros_like(x))         # (TN, C)
    x_label = jnp.dot(x_lab, ones, preferred_element_type=jnp.float32,
                      precision=lax.Precision.HIGHEST)                   # (TN, 1)

    # sum_c log_softmax = sum_x - C*(m + lse);  log_softmax[label] = x_label - m - lse
    m_lse = m + lse
    sum_logp = sum_x - jnp.float32(c) * m_lse
    logp_label = x_label - m_lse

    # per-row KL(t || softmax(x)) with smoothed target t (constants folded in)
    out_ref[...] = (jnp.float32(const_entropy)
                    - jnp.float32(confidence - off_value) * logp_label
                    - jnp.float32(off_value) * sum_logp)


def _pick_block_n(n: int, c: int, itemsize: int, budget_bytes: int = 8 << 20) -> int:
    # Per-row working-set estimate:
    #   2x double-buffered native logits tile + f32 exp tile
    #   + native one-hot select tile + i32 iota/compare headroom.
    bytes_per_row = c * (3 * itemsize + 8) + 64
    bn = budget_bytes // max(1, bytes_per_row)
    if bn >= n:
        return n                                # full-batch block
    align = max(8, 32 // max(1, itemsize))      # sublane tile x dtype packing
    bn = max(align, (bn // align) * align)
    return min(bn, n)


def label_smoothing_cross_entropy(outputs, labels, *, smoothing: float,
                                  classes: int, block_n: int | None = None):
    """outputs: (N, C) logits (any float dtype); labels: (N,) int. Returns scalar f32."""
    assert 0.0 <= smoothing < 1.0
    assert classes >= 2, "smoothing/(classes-1) needs classes >= 2"
    n, c = outputs.shape
    assert c == classes

    labels2d = labels.astype(jnp.int32).reshape(n, 1)

    # compile-time constants (no per-element log(t) in the kernel)
    confidence = 1.0 - smoothing
    off_value = smoothing / (classes - 1)
    log_conf = math.log(confidence)                              # confidence > 0
    log_off = math.log(off_value) if off_value > 0.0 else 0.0    # 0*log0 := 0
    const_entropy = confidence * log_conf + (classes - 1) * off_value * log_off

    if block_n is None:
        block_n = _pick_block_n(n, c, outputs.dtype.itemsize)
    block_n = min(block_n, n)
    num_tiles = pl.cdiv(n, block_n)

    kernel = functools.partial(
        _ls_kl_kernel,
        confidence=confidence,
        off_value=off_value,
        const_entropy=const_entropy,
    )

    row_losses = pl.pallas_call(
        kernel,
        out_shape=jax.ShapeDtypeStruct((n, 1), jnp.float32),
        grid_spec=pltpu.PrefetchScalarGridSpec(
            num_scalar_prefetch=0,
            grid=(num_tiles,),
            in_specs=[
                pl.BlockSpec((block_n, c), lambda i: (i, 0)),   # logits tile
                pl.BlockSpec((block_n, 1), lambda i: (i, 0)),   # labels tile
            ],
            out_specs=pl.BlockSpec((block_n, 1), lambda i: (i, 0)),  # per-row loss
        ),
        compiler_params=pltpu.CompilerParams(
            dimension_semantics=("parallel",),          # independent tiles (v7x: 2 TCs)
            vmem_limit_bytes=32 * 1024 * 1024,          # safe on v5e/v6e/v7x
        ),
    )(outputs, labels2d)

    # reduction='batchmean' -> divide the GLOBAL sum by N (tiny final XLA reduce)
    return jnp.sum(row_losses) * jnp.float32(1.0 / n)


def _reference(logits, labels, smoothing, classes):
    # Pure-JAX mirror of the PyTorch module.
    n = logits.shape[0]
    confidence = 1.0 - smoothing
    t = jnp.full((n, classes), smoothing / (classes - 1), dtype=jnp.float32)
    t = t.at[jnp.arange(n), labels].set(confidence)
    logp = jax.nn.log_softmax(logits.astype(jnp.float32), axis=1)
    kl = jnp.where(t > 0, t * (jnp.log(jnp.where(t > 0, t, 1.0)) - logp), 0.0)
    return jnp.sum(kl) / n


if __name__ == "__main__":
    smoothing = 0.1
    key = jax.random.PRNGKey(0)

    # --- case 1: tiny single-tile case matching the module's typical use ---
    classes, batch = 32, 8
    k1, k2, key = jax.random.split(key, 3)
    logits = jax.random.normal(k1, (batch, classes), dtype=jnp.float32)
    labels = jax.random.randint(k2, (batch,), 0, classes, dtype=jnp.int32)

    loss = label_smoothing_cross_entropy(logits, labels,
                                         smoothing=smoothing, classes=classes)
    jax.block_until_ready(loss)
    ref = _reference(logits, labels, smoothing, classes)
    assert jnp.allclose(loss, ref, atol=1e-4, rtol=1e-4), (loss, ref)

    # --- case 2: exercise the batch grid (3 tiles), bf16 inputs ---
    classes2, batch2 = 128, 24
    k3, k4, key = jax.random.split(key, 3)
    logits2 = jax.random.normal(k3, (batch2, classes2), dtype=jnp.bfloat16)
    labels2 = jax.random.randint(k4, (batch2,), 0, classes2, dtype=jnp.int32)

    loss2 = label_smoothing_cross_entropy(logits2, labels2,
                                          smoothing=smoothing, classes=classes2,
                                          block_n=8)
    jax.block_until_ready(loss2)
    ref2 = _reference(logits2, labels2, smoothing, classes2)
    assert jnp.allclose(loss2, ref2, atol=1e-2, rtol=1e-2), (loss2, ref2)

    # --- case 3: non-divisible batch -> partial last block (OOB rows dropped) ---
    classes3, batch3 = 64, 20
    k5, k6, _ = jax.random.split(key, 3)
    logits3 = jax.random.normal(k5, (batch3, classes3), dtype=jnp.float32)
    labels3 = jax.random.randint(k6, (batch3,), 0, classes3, dtype=jnp.int32)

    loss3 = label_smoothing_cross_entropy(logits3, labels3,
                                          smoothing=smoothing, classes=classes3,
                                          block_n=8)
    jax.block_until_ready(loss3)
    ref3 = _reference(logits3, labels3, smoothing, classes3)
    assert jnp.allclose(loss3, ref3, atol=1e-4, rtol=1e-4), (loss3, ref3)

    print("KERNEL_OK")
</pallas_src>

<mosaic_0001>
module attributes {stable_mosaic.version = 11 : i64} {
  func.func @_ls_kl_kernel(%arg0: i32, %arg1: memref<8x32xf32, #tpu.memory_space<vmem>>, %arg2: memref<8x1xi32, #tpu.memory_space<vmem>>, %arg3: memref<8x1xf32, #tpu.memory_space<vmem>>) attributes {dimension_semantics = [#tpu.dimension_semantics<parallel>], iteration_bounds = array<i64: 1>, scalar_prefetch = 0 : i64, scratch_operands = 0 : i64, tpu.core_type = #tpu.core_type<tc>, window_params = [{transform_indices = @transform_0, window_bounds = array<i64: 8, 32>}, {transform_indices = @transform_1, window_bounds = array<i64: 8, 1>}, {transform_indices = @transform_2, window_bounds = array<i64: 8, 1>}]} {
    %c0 = arith.constant 0 : index
    %c0_0 = arith.constant 0 : index
    %0 = vector.load %arg1[%c0, %c0_0] : memref<8x32xf32, #tpu.memory_space<vmem>>, vector<8x32xf32>
    %c0_1 = arith.constant 0 : index
    %c0_2 = arith.constant 0 : index
    %1 = vector.load %arg2[%c0_1, %c0_2] : memref<8x1xi32, #tpu.memory_space<vmem>>, vector<8x1xi32>
    %cst = arith.constant dense<0xFF800000> : vector<8xf32>
    %2 = vector.multi_reduction <maximumf>, %0, %cst [1] : vector<8x32xf32> to vector<8xf32>
    %3 = vector.shape_cast %2 : vector<8xf32> to vector<8x1xf32>
    %4 = vector.broadcast %3 : vector<8x1xf32> to vector<8x32xf32>
    %5 = arith.subf %0, %4 : vector<8x32xf32>
    %6 = math.exp %5 : vector<8x32xf32>
    %cst_3 = arith.constant dense<0.000000e+00> : vector<8xf32>
    %7 = vector.multi_reduction <add>, %6, %cst_3 [1] : vector<8x32xf32> to vector<8xf32>
    %8 = vector.shape_cast %7 : vector<8xf32> to vector<8x1xf32>
    %9 = math.log %8 : vector<8x1xf32>
    %cst_4 = arith.constant 1.000000e+00 : f32
    %10 = vector.broadcast %cst_4 : f32 to vector<32x1xf32>
    %cst_5 = arith.constant dense<0.000000e+00> : vector<8x1xf32>
    %11 = tpu.matmul %0, %10, %cst_5 {dimension_numbers = #tpu.dot_dimension_numbers<[1], [0], [0], [1], [0, 0, 1, 1], [], []>, precision = #tpu.contract_precision<fp32>} : vector<8x32xf32>, vector<32x1xf32>, vector<8x1xf32> -> vector<8x1xf32>
    %12 = tpu.iota {dimensions = array<i32: 1>} : vector<8x32xi32>
    %13 = vector.broadcast %1 : vector<8x1xi32> to vector<8x32xi32>
    %14 = arith.cmpi eq, %12, %13 : vector<8x32xi32>
    %cst_6 = arith.constant 0.000000e+00 : f32
    %15 = vector.broadcast %cst_6 : f32 to vector<8x32xf32>
    %16 = arith.select %14, %0, %15 : vector<8x32xi1>, vector<8x32xf32>
    %cst_7 = arith.constant dense<0.000000e+00> : vector<8x1xf32>
    %17 = tpu.matmul %16, %10, %cst_7 {dimension_numbers = #tpu.dot_dimension_numbers<[1], [0], [0], [1], [0, 0, 1, 1], [], []>, precision = #tpu.contract_precision<fp32>} : vector<8x32xf32>, vector<32x1xf32>, vector<8x1xf32> -> vector<8x1xf32>
    %18 = arith.addf %3, %9 : vector<8x1xf32>
    %cst_8 = arith.constant 3.200000e+01 : f32
    %19 = vector.broadcast %cst_8 : f32 to vector<8x1xf32>
    %20 = arith.mulf %19, %18 : vector<8x1xf32>
    %21 = arith.subf %11, %20 : vector<8x1xf32>
    %22 = arith.subf %17, %18 : vector<8x1xf32>
    %cst_9 = arith.constant 0.896774172 : f32
    %23 = vector.broadcast %cst_9 : f32 to vector<8x1xf32>
    %24 = arith.mulf %23, %22 : vector<8x1xf32>
    %cst_10 = arith.constant -0.668481708 : f32
    %25 = vector.broadcast %cst_10 : f32 to vector<8x1xf32>
    %26 = arith.subf %25, %24 : vector<8x1xf32>
    %cst_11 = arith.constant 0.0032258064 : f32
    %27 = vector.broadcast %cst_11 : f32 to vector<8x1xf32>
    %28 = arith.mulf %27, %21 : vector<8x1xf32>
    %29 = arith.subf %26, %28 : vector<8x1xf32>
    %c0_12 = arith.constant 0 : index
    %c0_13 = arith.constant 0 : index
    %30 = vector.load %arg3[%c0_12, %c0_13] : memref<8x1xf32, #tpu.memory_space<vmem>>, vector<8x1xf32>
    tpu.vector_store %arg3[%c0_12, %c0_13], %29 {strides = array<i32>} : memref<8x1xf32, #tpu.memory_space<vmem>>, vector<8x1xf32>,
    return
  }
  func.func @transform_0(%arg0: i32) -> (i32, i32) {
    %c0_i32 = arith.constant 0 : i32
    %c0_i32_0 = arith.constant 0 : i32
    return %arg0, %c0_i32 : i32, i32
  }
  func.func @transform_1(%arg0: i32) -> (i32, i32) {
    %c0_i32 = arith.constant 0 : i32
    %c0_i32_0 = arith.constant 0 : i32
    return %arg0, %c0_i32 : i32, i32
  }
  func.func @transform_2(%arg0: i32) -> (i32, i32) {
    %c0_i32 = arith.constant 0 : i32
    %c0_i32_0 = arith.constant 0 : i32
    return %arg0, %c0_i32 : i32, i32
  }
}

</mosaic_0001>

<bundles_post_ra>
// kernel: tpu_custom_call.1
= control target key start
LH: loop header
LB: loop body
LE: loop exit
PB: predicated region body
PF: predicated region fallthrough
CT: control target
= control target key end

     0   :  { %v326_v0 = vmov 0   ;;  %vm13_vm0 = vcmask 261120   ;;  %v327_v4 = vmov 0.0   ;;  %v328_v5 = vmov 1.0   ;;  %s363_s1 = inlined_call_operand.vmem [shape: s32[8,1], index: 1, kind: input, shape index: {}]   ;;  %s364_s0 = inlined_call_operand.vmem [shape: f32[8,32], index: 0, kind: input, shape index: {}]   ;;  %s365_s2 = inlined_call_operand.vmem [shape: f32[8,1], index: 2, kind: output, shape index: {}]  }
   0x1   :  { %321 = vset.pattern.permute.xlu0 %v326_v0  ;;  %v12_v1 = vld [vmem:[%s363_s1] sm:$0xff]  ;;  %68 = vmatpush.msra.mxu1 %v327_v4  ;;  %v161_v12 = vlaneseq  ;;  %vm312_vm2 = vcmask 7168  }
   0x2   :  { %164 = vperm.xlu0 %321, %v12_v1   ;;  %v350_v2 = vld [vmem:[%s364_s0] sm:$0xff]  ;;  %108 = vmatpush.msra.mxu3 %v328_v5 }
   0x3   :  { %v26_v3 = vsel %vm13_vm0, %v350_v2, 0  ;;  %89 = vmatpush.msra.mxu2 %v327_v4  ;;  %40 = vmatpush.msra.mxu0 %v328_v5  ;;  %v14_v9 = vsel %vm13_vm0, %v350_v2, -inf  ;;  %v162_v13 = vand.u32 127, %v161_v12 }
   0x4   :  { %v44_v6 = vand.u32 4294901760, %v26_v3  ;;  %109 = vmatpush.msra.mxu3 %v328_v5  ;;  %134 = vmatpush.msrb.mxu1 %v327_v4 }
   0x5   :  { %152 = vmatpush.msrb.mxu2 %v328_v5  ;;  %41 = vmatpush.msra.mxu0 %v328_v5 }
   0x6   :  { %70 = vmatmul.f32.vlgmr.msra.gmra.mxu1 %v44_v6  ;;  %v45_v7 = vsub.f32 %v26_v3, %v44_v6  ;;  %110 = vmatpush.msra.mxu3 %v328_v5 }
   0x7   :  { %153 = vmatpush.msrb.mxu2 %v328_v5  ;;  %232 = vmatpush.msra.mxu1 %v327_v4 }
   0x8   :  { %92 = vmatmul.f32.vlgmr.msra.gmra.mxu2 %v45_v7  ;;  %v46_v8 = vand.u32 4294901760, %v45_v7  ;;  %111 = vmatpush.msra.mxu3 %v328_v5 }
   0x9   :  { %154 = vmatpush.msrb.mxu2 %v328_v5  ;;  %42 = vmatpush.msra.mxu0 %v328_v5 }
   0xa   :  { %115 = vmatmul.f32.vlgmr.msra.gmra.mxu3 %v46_v8  ;;  %v47_v10 = vsub.f32 %v45_v7, %v46_v8 }
   0xb   :  { %211 = vmatpush.msrb.mxu3 %v327_v4  ;;  %155 = vmatpush.msrb.mxu2 %v328_v5 }
   0xc   :  { %43 = vmatpush.msra.mxu0 %v328_v5  ;;  %v48_v11 = vand.u32 4294901760, %v47_v10 }
   0xd   :  { %295 = vmatpush.msra.mxu3 %v328_v5  ;;  %251 = vmatpush.msra.mxu2 %v328_v5 }
   0xe   :  { %136 = vmatmul.f32.vlgmr.msrb.gmra.mxu1 %v44_v6  ;;  %183 = vmatpush.msrb.mxu0 %v328_v5 }
   0xf   :  { %296 = vmatpush.msra.mxu3 %v328_v5  ;;  %252 = vmatpush.msra.mxu2 %v328_v5 }
  0x10   :  { %157 = vmatmul.f32.vlgmr.msrb.gmra.mxu2 %v44_v6  ;;  %184 = vmatpush.msrb.mxu0 %v328_v5 }
  0x11   :  { %297 = vmatpush.msra.mxu3 %v328_v5  ;;  %253 = vmatpush.msra.mxu2 %v328_v5 }
  0x12   :  { %185 = vmatpush.msrb.mxu0 %v328_v5 }
  0x13   :  { %298 = vmatpush.msra.mxu3 %v328_v5  ;;  %254 = vmatpush.msra.mxu2 %v328_v5 }
  0x14   :  { %186 = vmatpush.msrb.mxu0 %v328_v5 }
  0x15   :  { %49 = vmatmul.f32.vlgmr.msra.gmra.mxu0 %v48_v11 }
  0x16   :  { %277 = vmatpush.msra.mxu0 %v327_v4 }
  0x2c   :  { %15 = vmax.xlane.f32.xlu0 %v14_v9 }
  0x74   :  { %v165_v14 = vpop.permute.xlu0 %164 }
  0x75   :  { %vm166_vm1 = vcmp.eq.s32.totalorder %v162_v13, %v165_v14 }
  0x76   :  { %v167_v15 = vsel %vm166_vm1, %v350_v2, 0.0 }
  0x77   :  { %v169_v16 = vsel %vm13_vm0, %v167_v15, 0 }
  0x78   :  { %v187_v17 = vand.u32 4294901760, %v169_v16 }
  0x7a   :  { %v188_v18 = vsub.f32 %v169_v16, %v187_v17  ;;  %213 = vmatmul.f32.vlgmr.msrb.gmra.mxu3 %v187_v17 }
  0x7c   :  { %235 = vmatmul.f32.vlgmr.msra.gmra.mxu1 %v188_v18  ;;  %v189_v19 = vand.u32 4294901760, %v188_v18 }
  0x7e   :  { %258 = vmatmul.f32.vlgmr.msra.gmra.mxu2 %v189_v19  ;;  %v190_v20 = vsub.f32 %v188_v18, %v189_v19 }
  0x80   :  { %v191_v21 = vand.u32 4294901760, %v190_v20 }
  0x82   :  { %192 = vmatmul.f32.vlgmr.msrb.gmra.mxu0 %v191_v21  ;;  %300 = vmatmul.f32.vlgmr.msra.gmra.mxu3 %v187_v17 }
  0x83   :  { %v71_v27 = vpop.f32.mrf.mxu1 }
  0x8a   :  { %279 = vmatmul.f32.vlgmr.msra.gmra.mxu0 %v187_v17 }
  0x8b   :  { %v93_v28 = vpop.f32.mrf.mxu2  ;;  %v137_v31 = vpop.f32.mrf.mxu1 }
  0x8d   :  { %v116_v30 = vpop.f32.mrf.mxu3 }
  0x92   :  { %v50_v29 = vpop.f32.mrf.mxu0 }
  0x93   :  { %v158_v32 = vpop.f32.mrf.mxu2  ;;  %v72_v35 = vadd.f32 %v71_v27, %v50_v29 }
  0x95   :  { %v94_v38 = vadd.f32 %v93_v28, %v72_v35 }
  0x97   :  { %v117_v43 = vadd.f32 %v116_v30, %v94_v38 }
  0x99   :  { %v138_v47 = vadd.f32 %v137_v31, %v117_v43 }
  0x9b   :  { %v159_v52 = vadd.f32 %v158_v32, %v138_v47 }
  0x9f   :  { %v16_v22 = vpop.xlane.xlu0 %15 }
  0xa0   :  { %v17_v23 = vsub.f32 %v350_v2, %v16_v22 }
  0xa2   :  { %v18_v24 = vmul.f32 1.442695, %v17_v23 }
  0xa4   :  { %322 = vpow2.f32 %v18_v24 }
  0xaa   :  { %v323_v25 = vpop.eup %322 }
  0xab   :  { %v20_v26 = vsel %vm13_vm0, %v323_v25, 0.0 }
  0xac   :  { %21 = vadd.xlane.f32.xlu1 %v20_v26 }
  0xf9   :  { %v236_v37 = vpop.f32.mrf.mxu1 }
  0xfd   :  { %v214_v34 = vpop.f32.mrf.mxu3 }
  0xff   :  { %v193_v33 = vpop.f32.mrf.mxu0 }
 0x100   :  { %v215_v36 = vadd.f32 %v214_v34, %v193_v33 }
 0x101   :  { %v259_v41 = vpop.f32.mrf.mxu2 }
 0x102   :  { %v237_v39 = vadd.f32 %v236_v37, %v215_v36 }
 0x104   :  { %v260_v44 = vadd.f32 %v259_v41, %v237_v39 }
 0x105   :  { %v301_v49 = vpop.f32.mrf.mxu3 }
 0x107   :  { %v280_v42 = vpop.f32.mrf.mxu0 }
 0x108   :  { %v281_v45 = vadd.f32 %v280_v42, %v260_v44 }
 0x10a   :  { %v302_v50 = vadd.f32 %v301_v49, %v281_v45 }
 0x11f   :  { %v22_v40 = vpop.xlane.xlu1 %21 }
 0x120   :  { %324 = vlog2.f32 %v22_v40 }
 0x126   :  { %v325_v46 = vpop.eup %324 }
 0x127   :  { %v24_v48 = vmul.f32 0.6931472, %v325_v46 }
 0x129   :  { %v304_v51 = vadd.f32 %v24_v48, %v16_v22 }
 0x12b   :  { %v305_v53 = vmul.f32 32.0, %v304_v51  ;;  %v307_v54 = vsub.f32 %v302_v50, %v304_v51 }
 0x12d   :  { %v306_v55 = vsub.f32 %v159_v52, %v305_v53  ;;  %v308_v56 = vmul.f32 0.8967742, %v307_v54 }
 0x12f   :  { %v309_v57 = vsub.f32 -0.6684817, %v308_v56  ;;  %v310_v58 = vmul.f32 0.0032258064, %v306_v55 }
 0x131   :  { %v311_v59 = vsub.f32 %v309_v57, %v310_v58 }
 0x133   :  { %313 = vst.msk [vmem:[%s365_s2] sm:$0xff] %vm312_vm2, %v311_v59 }

</bundles_post_ra>
